<compile_context>
chip_gen: v6e
topology: v6e:2x2x1
jax: 0.10.0
libtpu: 0.0.40
codegen_flags: <defaults>
</compile_context>

<pallas_src>
import functools
import math

import jax
import jax.numpy as jnp
from jax.experimental import pallas as pl
from jax.experimental.pallas import tpu as pltpu

MIN_STD = 0.001
_LOG_SQRT_2PI = 0.5 * math.log(2.0 * math.pi)
_LOG2 = math.log(2.0)

# Lane-dense batch rows per grid step.  Per-step streamed VMEM (obs+eps+action
# +logp, double buffered) is ~4 MiB at obs_dim=16/act_dim=8, plus ~3 MiB of
# [h, block_b] intermediates -- comfortably under the default 32 MiB scoped
# limit on v5e/v6e/v7x while amortizing the ~0.35 us/step grid overhead.
_DEFAULT_BLOCK_B = 16384


def _actor_kernel(obs_ref, eps_ref,
                  w0_ref, b0_ref, w1_ref, b1_ref,
                  wh_ref, bh_ref,
                  span_ref, maxa_ref,
                  action_ref, logp_ref):
    # All streamed refs are feature-major: [feature, block_b].
    act_dim = action_ref.shape[0]

    x = obs_ref[...]                                           # [obs_dim, bb]

    # shared MLP (two Linear + ReLU, active_final=True), feature-major
    h = jnp.dot(w0_ref[...], x, preferred_element_type=jnp.float32) + b0_ref[...]
    h = jnp.maximum(h, 0.0)
    h = jnp.dot(w1_ref[...], h, preferred_element_type=jnp.float32) + b1_ref[...]
    h = jnp.maximum(h, 0.0)

    # fused mean|std head: one MXU pass, then a sublane-aligned split
    head = jnp.dot(wh_ref[...], h, preferred_element_type=jnp.float32) + bh_ref[...]
    mean = head[:act_dim, :]                                   # [act, bb]
    std_raw = head[act_dim:, :]                                # [act, bb]

    # scale = softplus(std_raw) + min_std
    scale = jnp.logaddexp(std_raw, 0.0) + MIN_STD

    # reparameterized sample, pre-tanh
    eps = eps_ref[...]
    pre_tanh = mean + scale * eps

    # One exp serves both tanh(pre_tanh) and the tanh-Jacobian:
    #   e = exp(-2|x|)
    #   tanh(x)                     = sign(x) * (1 - e) / (1 + e)
    #   2*(log2 - x - softplus(-2x)) = 2*(log2 - |x| - log1p(e))
    abs_x = jnp.abs(pre_tanh)
    e = jnp.exp(-2.0 * abs_x)
    log1p_e = jnp.log1p(e)
    # approx=False keeps the 2e-5 action tolerance; approx=True moves the
    # reciprocal to the idle EUP slot at ~12-bit accuracy if that is enough.
    t = (1.0 - e) * pl.reciprocal(1.0 + e, approx=False)
    squashed = jnp.where(pre_tanh < 0.0, -t, t)

    # Normal log-prob at pre_tanh; z = (pre_tanh - mean)/scale == eps exactly.
    base_lp = -0.5 * eps * eps - jnp.log(scale) - _LOG_SQRT_2PI
    log_det = 2.0 * (_LOG2 - abs_x - log1p_e)
    lp = base_lp - log_det

    logp_ref[...] = jnp.sum(lp, axis=0, keepdims=True)         # [1, bb]

    # Matches the module: (max-min)*(tanh(x)+1)+min == span*tanh(x) + max
    action_ref[...] = span_ref[...] * squashed + maxa_ref[...]


@functools.partial(jax.jit, static_argnames=("block_b",))
def squashed_gaussian_actor(obs, eps, params, max_action, min_action,
                            *, block_b=_DEFAULT_BLOCK_B):
    """obs: [B, obs_dim] f32, eps: [B, act_dim] f32 (standard-normal noise).

    Returns (action [B, act_dim], log_prob [B, 1]).
    Internally everything is streamed feature-major ([feat, B]) so the batch
    axis lands on the 128-lane axis; callers that can hold activations
    transposed can skip the wrapper transposes entirely.
    """
    b, obs_dim = obs.shape
    act_dim = eps.shape[1]
    h0 = params["w0"].shape[1]
    h1 = params["w1"].shape[1]

    # Feature-major streams.
    obs_t = obs.T                                        # [obs_dim, B]
    eps_t = eps.T                                        # [act_dim, B]

    # Pre-transposed weights; mean/std heads fused into one [2*act, h1] matmul.
    w0_t = params["w0"].T                                # [h0, obs_dim]
    b0_t = params["b0"].reshape(-1, 1)                   # [h0, 1]
    w1_t = params["w1"].T                                # [h1, h0]
    b1_t = params["b1"].reshape(-1, 1)                   # [h1, 1]
    wh_t = jnp.concatenate([params["wm"], params["ws"]], axis=1).T   # [2*act, h1]
    bh_t = jnp.concatenate([params["bm"], params["bs"]], axis=1).reshape(-1, 1)
    span = (max_action - min_action).reshape(-1, 1)      # [act, 1]
    maxa = max_action.reshape(-1, 1)                     # [act, 1]

    # Block size: lane-aligned, and at least 2 grid steps for large B so the
    # "parallel" grid axis can shard across v7x's two TensorCores.
    if b >= 256:
        two_step = ((b + 1) // 2 + 127) // 128 * 128
        block_b = min(block_b, two_step)
    block_b = min(block_b, b)
    grid = (pl.cdiv(b, block_b),)

    def stream(feat):       # batch-streamed arrays (new block every grid step)
        return pl.BlockSpec((feat, block_b), lambda i: (0, i))

    def resident(shape):    # weights / biases / bounds: same block every step
        return pl.BlockSpec(shape, lambda i: (0, 0))

    cost = pl.CostEstimate(
        flops=2 * b * (obs_dim * h0 + h0 * h1 + h1 * 2 * act_dim),
        transcendentals=6 * b * act_dim,
        bytes_accessed=4 * (b * (obs_dim + 3 * act_dim + 1)
                            + obs_dim * h0 + h0 * h1 + h1 * 2 * act_dim
                            + h0 + h1 + 4 * act_dim),
    )

    action_t, logp_t = pl.pallas_call(
        _actor_kernel,
        out_shape=(
            jax.ShapeDtypeStruct((act_dim, b), jnp.float32),
            jax.ShapeDtypeStruct((1, b), jnp.float32),
        ),
        grid=grid,
        in_specs=[
            stream(obs_dim),                 # obs (feature-major)
            stream(act_dim),                 # eps (feature-major)
            resident(w0_t.shape), resident(b0_t.shape),
            resident(w1_t.shape), resident(b1_t.shape),
            resident(wh_t.shape), resident(bh_t.shape),
            resident(span.shape), resident(maxa.shape),
        ],
        out_specs=(stream(act_dim), stream(1)),
        compiler_params=pltpu.CompilerParams(
            dimension_semantics=("parallel",)),
        cost_estimate=cost,
    )(
        obs_t, eps_t,
        w0_t, b0_t, w1_t, b1_t,
        wh_t, bh_t,
        span, maxa,
    )
    # Hand back the module's [B, feat] contract.
    return action_t.T, logp_t.T


def _torch_linear_init(key, in_dim, out_dim):
    """Deterministic init mimicking torch.nn.Linear (uniform +/- 1/sqrt(in))."""
    kw, kb = jax.random.split(key)
    bound = 1.0 / math.sqrt(in_dim)
    w = jax.random.uniform(kw, (in_dim, out_dim), jnp.float32, -bound, bound)
    bias = jax.random.uniform(kb, (1, out_dim), jnp.float32, -bound, bound)
    return w, bias


def _reference(obs, eps, params, max_action, min_action):
    """Pure-JAX transcription of the PyTorch forward pass (separate heads)."""
    h = jnp.maximum(obs @ params["w0"] + params["b0"], 0.0)
    h = jnp.maximum(h @ params["w1"] + params["b1"], 0.0)
    mean = h @ params["wm"] + params["bm"]
    std_raw = h @ params["ws"] + params["bs"]
    scale = jnp.logaddexp(std_raw, 0.0) + MIN_STD
    pre = mean + scale * eps
    sq = jnp.tanh(pre)
    base_lp = -0.5 * ((pre - mean) / scale) ** 2 - jnp.log(scale) - _LOG_SQRT_2PI
    log_det = 2.0 * (_LOG2 - pre - jnp.logaddexp(-2.0 * pre, 0.0))
    lp = jnp.sum(base_lp - log_det, axis=1, keepdims=True)
    act = (max_action - min_action) * (sq + 1.0) + min_action
    return act, lp


if __name__ == "__main__":
    # small shapes consistent with the module
    batch = 8
    obs_dim = 16
    act_dim = 8
    layers_dim = [32, 32]   # shared MLP: obs->32->32 (both ReLU)

    key = jax.random.PRNGKey(0)
    k_obs, k_eps, k0, k1, km, ks = jax.random.split(key, 6)

    obs = jax.random.normal(k_obs, (batch, obs_dim), jnp.float32)
    # TODO(synk): torch's Normal.rsample draws noise internally; there is no
    # in-kernel equivalent of torch's RNG stream, so eps is an explicit input.
    eps = jax.random.normal(k_eps, (batch, act_dim), jnp.float32)

    w0, b0 = _torch_linear_init(k0, obs_dim, layers_dim[0])
    w1, b1 = _torch_linear_init(k1, layers_dim[0], layers_dim[1])
    wm, bm = _torch_linear_init(km, layers_dim[1], act_dim)
    ws, bs = _torch_linear_init(ks, layers_dim[1], act_dim)
    params = dict(w0=w0, b0=b0, w1=w1, b1=b1, wm=wm, bm=bm, ws=ws, bs=bs)

    max_action = jnp.ones((act_dim,), jnp.float32)
    min_action = -jnp.ones((act_dim,), jnp.float32)

    action, log_prob = squashed_gaussian_actor(
        obs, eps, params, max_action, min_action, block_b=8)
    jax.block_until_ready((action, log_prob))

    ref_action, ref_lp = _reference(obs, eps, params, max_action, min_action)
    assert action.shape == (batch, act_dim) and log_prob.shape == (batch, 1)
    assert jnp.allclose(action, ref_action, atol=2e-5, rtol=2e-5)
    assert jnp.allclose(log_prob, ref_lp, atol=1e-4, rtol=1e-4)

    print("KERNEL_OK")
</pallas_src>

<mosaic_0001>
module attributes {stable_mosaic.version = 11 : i64} {
  func.func @_actor_kernel(%arg0: i32, %arg1: memref<16x8xf32, #tpu.memory_space<vmem>>, %arg2: memref<8x8xf32, #tpu.memory_space<vmem>>, %arg3: memref<32x16xf32, #tpu.memory_space<vmem>>, %arg4: memref<32x1xf32, #tpu.memory_space<vmem>>, %arg5: memref<32x32xf32, #tpu.memory_space<vmem>>, %arg6: memref<32x1xf32, #tpu.memory_space<vmem>>, %arg7: memref<16x32xf32, #tpu.memory_space<vmem>>, %arg8: memref<16x1xf32, #tpu.memory_space<vmem>>, %arg9: memref<8x1xf32, #tpu.memory_space<vmem>>, %arg10: memref<8x1xf32, #tpu.memory_space<vmem>>, %arg11: memref<8x8xf32, #tpu.memory_space<vmem>>, %arg12: memref<1x8xf32, #tpu.memory_space<vmem>>) attributes {dimension_semantics = [#tpu.dimension_semantics<parallel>], iteration_bounds = array<i64: 1>, scalar_prefetch = 0 : i64, scratch_operands = 0 : i64, tpu.core_type = #tpu.core_type<tc>, window_params = [{transform_indices = @transform_0, window_bounds = array<i64: 16, 8>}, {transform_indices = @transform_1, window_bounds = array<i64: 8, 8>}, {pipeline_mode = #tpu.pipeline_mode<synchronous>, transform_indices = @transform_2, window_bounds = array<i64: 32, 16>}, {pipeline_mode = #tpu.pipeline_mode<synchronous>, transform_indices = @transform_3, window_bounds = array<i64: 32, 1>}, {pipeline_mode = #tpu.pipeline_mode<synchronous>, transform_indices = @transform_4, window_bounds = array<i64: 32, 32>}, {pipeline_mode = #tpu.pipeline_mode<synchronous>, transform_indices = @transform_5, window_bounds = array<i64: 32, 1>}, {pipeline_mode = #tpu.pipeline_mode<synchronous>, transform_indices = @transform_6, window_bounds = array<i64: 16, 32>}, {pipeline_mode = #tpu.pipeline_mode<synchronous>, transform_indices = @transform_7, window_bounds = array<i64: 16, 1>}, {pipeline_mode = #tpu.pipeline_mode<synchronous>, transform_indices = @transform_8, window_bounds = array<i64: 8, 1>}, {pipeline_mode = #tpu.pipeline_mode<synchronous>, transform_indices = @transform_9, window_bounds = array<i64: 8, 1>}, {transform_indices = @transform_10, window_bounds = array<i64: 8, 8>}, {transform_indices = @transform_11, window_bounds = array<i64: 1, 8>}]} {
    %c0 = arith.constant 0 : index
    %c0_0 = arith.constant 0 : index
    %0 = vector.load %arg1[%c0, %c0_0] : memref<16x8xf32, #tpu.memory_space<vmem>>, vector<16x8xf32>
    %c0_1 = arith.constant 0 : index
    %c0_2 = arith.constant 0 : index
    %1 = vector.load %arg3[%c0_1, %c0_2] : memref<32x16xf32, #tpu.memory_space<vmem>>, vector<32x16xf32>
    %cst = arith.constant dense<0.000000e+00> : vector<32x8xf32>
    %2 = tpu.matmul %1, %0, %cst {dimension_numbers = #tpu.dot_dimension_numbers<[1], [0], [0], [1], [0, 0, 1, 1], [], []>} : vector<32x16xf32>, vector<16x8xf32>, vector<32x8xf32> -> vector<32x8xf32>
    %c0_3 = arith.constant 0 : index
    %c0_4 = arith.constant 0 : index
    %3 = vector.load %arg4[%c0_3, %c0_4] : memref<32x1xf32, #tpu.memory_space<vmem>>, vector<32x1xf32>
    %4 = vector.broadcast %3 : vector<32x1xf32> to vector<32x8xf32>
    %5 = arith.addf %2, %4 : vector<32x8xf32>
    %cst_5 = arith.constant 0.000000e+00 : f32
    %6 = vector.broadcast %cst_5 : f32 to vector<32x8xf32>
    %7 = arith.maximumf %5, %6 : vector<32x8xf32>
    %c0_6 = arith.constant 0 : index
    %c0_7 = arith.constant 0 : index
    %8 = vector.load %arg5[%c0_6, %c0_7] : memref<32x32xf32, #tpu.memory_space<vmem>>, vector<32x32xf32>
    %cst_8 = arith.constant dense<0.000000e+00> : vector<32x8xf32>
    %9 = tpu.matmul %8, %7, %cst_8 {dimension_numbers = #tpu.dot_dimension_numbers<[1], [0], [0], [1], [0, 0, 1, 1], [], []>} : vector<32x32xf32>, vector<32x8xf32>, vector<32x8xf32> -> vector<32x8xf32>
    %c0_9 = arith.constant 0 : index
    %c0_10 = arith.constant 0 : index
    %10 = vector.load %arg6[%c0_9, %c0_10] : memref<32x1xf32, #tpu.memory_space<vmem>>, vector<32x1xf32>
    %11 = vector.broadcast %10 : vector<32x1xf32> to vector<32x8xf32>
    %12 = arith.addf %9, %11 : vector<32x8xf32>
    %cst_11 = arith.constant 0.000000e+00 : f32
    %13 = vector.broadcast %cst_11 : f32 to vector<32x8xf32>
    %14 = arith.maximumf %12, %13 : vector<32x8xf32>
    %c0_12 = arith.constant 0 : index
    %c0_13 = arith.constant 0 : index
    %15 = vector.load %arg7[%c0_12, %c0_13] : memref<16x32xf32, #tpu.memory_space<vmem>>, vector<16x32xf32>
    %cst_14 = arith.constant dense<0.000000e+00> : vector<16x8xf32>
    %16 = tpu.matmul %15, %14, %cst_14 {dimension_numbers = #tpu.dot_dimension_numbers<[1], [0], [0], [1], [0, 0, 1, 1], [], []>} : vector<16x32xf32>, vector<32x8xf32>, vector<16x8xf32> -> vector<16x8xf32>
    %c0_15 = arith.constant 0 : index
    %c0_16 = arith.constant 0 : index
    %17 = vector.load %arg8[%c0_15, %c0_16] : memref<16x1xf32, #tpu.memory_space<vmem>>, vector<16x1xf32>
    %18 = vector.broadcast %17 : vector<16x1xf32> to vector<16x8xf32>
    %19 = arith.addf %16, %18 : vector<16x8xf32>
    %20 = vector.extract_strided_slice %19 {offsets = [0, 0], sizes = [8, 8], strides = [1, 1]} : vector<16x8xf32> to vector<8x8xf32>
    %21 = vector.extract_strided_slice %19 {offsets = [8, 0], sizes = [8, 8], strides = [1, 1]} : vector<16x8xf32> to vector<8x8xf32>
    %cst_17 = arith.constant 0.000000e+00 : f32
    %22 = vector.broadcast %cst_17 : f32 to vector<8x8xf32>
    %23 = arith.maximumf %21, %22 : vector<8x8xf32>
    %24 = vector.broadcast %cst_17 : f32 to vector<8x8xf32>
    %25 = arith.subf %21, %24 : vector<8x8xf32>
    %26 = arith.cmpf one, %25, %25 : vector<8x8xf32>
    %27 = vector.broadcast %cst_17 : f32 to vector<8x8xf32>
    %28 = arith.addf %21, %27 : vector<8x8xf32>
    %29 = math.absf %25 : vector<8x8xf32>
    %cst_18 = arith.constant 0.000000e+00 : f32
    %30 = vector.broadcast %cst_18 : f32 to vector<8x8xf32>
    %31 = arith.subf %30, %29 : vector<8x8xf32>
    %32 = math.exp %31 : vector<8x8xf32>
    %33 = math.log1p %32 : vector<8x8xf32>
    %34 = arith.addf %23, %33 : vector<8x8xf32>
    %35 = arith.select %26, %28, %34 : vector<8x8xi1>, vector<8x8xf32>
    %cst_19 = arith.constant 1.000000e-03 : f32
    %36 = vector.broadcast %cst_19 : f32 to vector<8x8xf32>
    %37 = arith.addf %35, %36 : vector<8x8xf32>
    %c0_20 = arith.constant 0 : index
    %c0_21 = arith.constant 0 : index
    %38 = vector.load %arg2[%c0_20, %c0_21] : memref<8x8xf32, #tpu.memory_space<vmem>>, vector<8x8xf32>
    %39 = arith.mulf %37, %38 : vector<8x8xf32>
    %40 = arith.addf %20, %39 : vector<8x8xf32>
    %41 = math.absf %40 : vector<8x8xf32>
    %cst_22 = arith.constant -2.000000e+00 : f32
    %42 = vector.broadcast %cst_22 : f32 to vector<8x8xf32>
    %43 = arith.mulf %42, %41 : vector<8x8xf32>
    %44 = math.exp %43 : vector<8x8xf32>
    %45 = math.log1p %44 : vector<8x8xf32>
    %cst_23 = arith.constant 1.000000e+00 : f32
    %46 = vector.broadcast %cst_23 : f32 to vector<8x8xf32>
    %47 = arith.subf %46, %44 : vector<8x8xf32>
    %cst_24 = arith.constant 1.000000e+00 : f32
    %48 = vector.broadcast %cst_24 : f32 to vector<8x8xf32>
    %49 = arith.addf %48, %44 : vector<8x8xf32>
    %50 = tpu.reciprocal %49 : vector<8x8xf32> -> vector<8x8xf32>
    %51 = arith.mulf %47, %50 : vector<8x8xf32>
    %cst_25 = arith.constant 0.000000e+00 : f32
    %52 = vector.broadcast %cst_25 : f32 to vector<8x8xf32>
    %53 = arith.cmpf olt, %40, %52 : vector<8x8xf32>
    %cst_26 = arith.constant 0.000000e+00 : f32
    %54 = vector.broadcast %cst_26 : f32 to vector<8x8xf32>
    %55 = arith.subf %54, %51 : vector<8x8xf32>
    %56 = arith.select %53, %55, %51 : vector<8x8xi1>, vector<8x8xf32>
    %cst_27 = arith.constant -5.000000e-01 : f32
    %57 = vector.broadcast %cst_27 : f32 to vector<8x8xf32>
    %58 = arith.mulf %57, %38 : vector<8x8xf32>
    %59 = arith.mulf %58, %38 : vector<8x8xf32>
    %60 = math.log %37 : vector<8x8xf32>
    %61 = arith.subf %59, %60 : vector<8x8xf32>
    %cst_28 = arith.constant 0.918938517 : f32
    %62 = vector.broadcast %cst_28 : f32 to vector<8x8xf32>
    %63 = arith.subf %61, %62 : vector<8x8xf32>
    %cst_29 = arith.constant 0.693147182 : f32
    %64 = vector.broadcast %cst_29 : f32 to vector<8x8xf32>
    %65 = arith.subf %64, %41 : vector<8x8xf32>
    %66 = arith.subf %65, %45 : vector<8x8xf32>
    %cst_30 = arith.constant 2.000000e+00 : f32
    %67 = vector.broadcast %cst_30 : f32 to vector<8x8xf32>
    %68 = arith.mulf %67, %66 : vector<8x8xf32>
    %69 = arith.subf %63, %68 : vector<8x8xf32>
    %cst_31 = arith.constant dense<0.000000e+00> : vector<8xf32>
    %70 = vector.multi_reduction <add>, %69, %cst_31 [0] : vector<8x8xf32> to vector<8xf32>
    %71 = vector.shape_cast %70 : vector<8xf32> to vector<1x8xf32>
    %c0_32 = arith.constant 0 : index
    %c0_33 = arith.constant 0 : index
    %72 = vector.load %arg12[%c0_32, %c0_33] : memref<1x8xf32, #tpu.memory_space<vmem>>, vector<1x8xf32>
    tpu.vector_store %arg12[%c0_32, %c0_33], %71 {strides = array<i32>} : memref<1x8xf32, #tpu.memory_space<vmem>>, vector<1x8xf32>,
    %c0_34 = arith.constant 0 : index
    %c0_35 = arith.constant 0 : index
    %73 = vector.load %arg9[%c0_34, %c0_35] : memref<8x1xf32, #tpu.memory_space<vmem>>, vector<8x1xf32>
    %74 = vector.broadcast %73 : vector<8x1xf32> to vector<8x8xf32>
    %75 = arith.mulf %74, %56 : vector<8x8xf32>
    %c0_36 = arith.constant 0 : index
    %c0_37 = arith.constant 0 : index
    %76 = vector.load %arg10[%c0_36, %c0_37] : memref<8x1xf32, #tpu.memory_space<vmem>>, vector<8x1xf32>
    %77 = vector.broadcast %76 : vector<8x1xf32> to vector<8x8xf32>
    %78 = arith.addf %75, %77 : vector<8x8xf32>
    %c0_38 = arith.constant 0 : index
    %c0_39 = arith.constant 0 : index
    %79 = vector.load %arg11[%c0_38, %c0_39] : memref<8x8xf32, #tpu.memory_space<vmem>>, vector<8x8xf32>
    tpu.vector_store %arg11[%c0_38, %c0_39], %78 {strides = array<i32>} : memref<8x8xf32, #tpu.memory_space<vmem>>, vector<8x8xf32>,
    return
  }
  func.func @transform_0(%arg0: i32) -> (i32, i32) {
    %c0_i32 = arith.constant 0 : i32
    %c0_i32_0 = arith.constant 0 : i32
    return %c0_i32, %arg0 : i32, i32
  }
  func.func @transform_1(%arg0: i32) -> (i32, i32) {
    %c0_i32 = arith.constant 0 : i32
    %c0_i32_0 = arith.constant 0 : i32
    return %c0_i32, %arg0 : i32, i32
  }
  func.func @transform_2(%arg0: i32) -> (i32, i32) {
    %c0_i32 = arith.constant 0 : i32
    %c0_i32_0 = arith.constant 0 : i32
    %c0_i32_1 = arith.constant 0 : i32
    return %c0_i32, %c0_i32_0 : i32, i32
  }
  func.func @transform_3(%arg0: i32) -> (i32, i32) {
    %c0_i32 = arith.constant 0 : i32
    %c0_i32_0 = arith.constant 0 : i32
    %c0_i32_1 = arith.constant 0 : i32
    return %c0_i32, %c0_i32_0 : i32, i32
  }
  func.func @transform_4(%arg0: i32) -> (i32, i32) {
    %c0_i32 = arith.constant 0 : i32
    %c0_i32_0 = arith.constant 0 : i32
    %c0_i32_1 = arith.constant 0 : i32
    return %c0_i32, %c0_i32_0 : i32, i32
  }
  func.func @transform_5(%arg0: i32) -> (i32, i32) {
    %c0_i32 = arith.constant 0 : i32
    %c0_i32_0 = arith.constant 0 : i32
    %c0_i32_1 = arith.constant 0 : i32
    return %c0_i32, %c0_i32_0 : i32, i32
  }
  func.func @transform_6(%arg0: i32) -> (i32, i32) {
    %c0_i32 = arith.constant 0 : i32
    %c0_i32_0 = arith.constant 0 : i32
    %c0_i32_1 = arith.constant 0 : i32
    return %c0_i32, %c0_i32_0 : i32, i32
  }
  func.func @transform_7(%arg0: i32) -> (i32, i32) {
    %c0_i32 = arith.constant 0 : i32
    %c0_i32_0 = arith.constant 0 : i32
    %c0_i32_1 = arith.constant 0 : i32
    return %c0_i32, %c0_i32_0 : i32, i32
  }
  func.func @transform_8(%arg0: i32) -> (i32, i32) {
    %c0_i32 = arith.constant 0 : i32
    %c0_i32_0 = arith.constant 0 : i32
    %c0_i32_1 = arith.constant 0 : i32
    return %c0_i32, %c0_i32_0 : i32, i32
  }
  func.func @transform_9(%arg0: i32) -> (i32, i32) {
    %c0_i32 = arith.constant 0 : i32
    %c0_i32_0 = arith.constant 0 : i32
    %c0_i32_1 = arith.constant 0 : i32
    return %c0_i32, %c0_i32_0 : i32, i32
  }
  func.func @transform_10(%arg0: i32) -> (i32, i32) {
    %c0_i32 = arith.constant 0 : i32
    %c0_i32_0 = arith.constant 0 : i32
    return %c0_i32, %arg0 : i32, i32
  }
  func.func @transform_11(%arg0: i32) -> (i32, i32) {
    %c0_i32 = arith.constant 0 : i32
    %c0_i32_0 = arith.constant 0 : i32
    return %c0_i32, %arg0 : i32, i32
  }
}

</mosaic_0001>

<bundles_post_ra>
// kernel: squashed_gaussian_actor.1
= control target key start
LH: loop header
LB: loop body
LE: loop exit
PB: predicated region body
PF: predicated region fallthrough
CT: control target
= control target key end

     0   :  { %vm68_vm0 = vcmask 130048   ;;  %v594_v4 = vmov 0   ;;  %s747_s0 = inlined_call_operand.vmem [shape: f32[16,8], index: 0, kind: input, shape index: {}]   ;;  %s748_s1 = inlined_call_operand.vmem [shape: f32[8,8], index: 1, kind: input, shape index: {}]   ;;  %s749_s2 = inlined_call_operand.vmem [shape: f32[32,16], index: 2, kind: input, shape index: {}]   ;;  %s750_s3 = inlined_call_operand.vmem [shape: f32[32,1], index: 3, kind: input, shape index: {}]   ;;  %s751_s4 = inlined_call_operand.vmem [shape: f32[32,32], index: 4, kind: input, shape index: {}]   ;;  %s752_s5 = inlined_call_operand.vmem [shape: f32[32,1], index: 5, kind: input, shape index: {}]   ;;  %s753_s6 = inlined_call_operand.vmem [shape: f32[16,32], index: 6, kind: input, shape index: {}]   ;;  %s754_s7 = inlined_call_operand.vmem [shape: f32[16,1], index: 7, kind: input, shape index: {}]   ;;  %s755_s8 = inlined_call_operand.vmem [shape: f32[8,1], index: 8, kind: input, shape index: {}]   ;;  %s756_s9 = inlined_call_operand.vmem [shape: f32[8,1], index: 9, kind: input, shape index: {}]   ;;  %s757_s10 = inlined_call_operand.vmem [shape: f32[8,8], index: 10, kind: output, shape index: {0}]   ;;  %s758_s11 = inlined_call_operand.hbm [shape: f32[1,8], index: 11, kind: output, shape index: {1}]  }
   0x1   :  { %v39_v0 = vld [vmem:[%s747_s0 + $0x8] sm:$0xff]  ;;  %v38_v1 = vld [vmem:[%s747_s0] sm:$0xff]  ;;  %558 = vset.pattern.permute.xlu0 %v594_v4  ;;  %v47_v5 = vld [vmem:[%s750_s3 + $0x18] sm:$0xff]  ;;  %559 = vset.pattern.permute.xlu1 %v594_v4 }
   0x2   :  { %v40_v2 = vld [vmem:[%s749_s2] sm:$0xff]  ;;  %521 = vmatprep.subr.mxu0 %v39_v0  ;;  %v41_v3 = vld [vmem:[%s749_s2 + $0x8] sm:$0xff]  ;;  %v42_v7 = vld [vmem:[%s749_s2 + $0x10] sm:$0xff]  ;;  %65 = vperm.xlu0 %558, %v47_v5  }
   0x3   :  { %525 = vmatprep.mubr.msk.f32.mxu0 %vm68_vm0, %v40_v2  ;;  %522 = vmatpush3.msra.mxu0 %v39_v0  ;;  %v45_v6 = vld [vmem:[%s750_s3 + $0x8] sm:$0xff]  ;;  %v46_v8 = vld [vmem:[%s750_s3 + $0x10] sm:$0xff]  ;;  %v43_v9 = vld [vmem:[%s749_s2 + $0x18] sm:$0xff] }
   0x4   :  { %523 = vmatprep.subr.mxu0 %v38_v1  ;;  %55 = vperm.xlu1 %559, %v45_v6   ;;  %v44_v10 = vld [vmem:[%s750_s3] sm:$0xff] }
   0x5   :  { %524 = vmatpush3.msra.mxu0 %v38_v1 }
   0x6   :  { %526 = vmatmul.mubr.msk.f32.vlgmr.msra.gmra.mxu0 %vm68_vm0, %v41_v3 }
   0x7   :  { %528 = vmatprep.mubr.msk.f32.mxu0 %vm68_vm0, %v42_v7 }
   0x8   :  { %17 = vsyncpa [#allocation3], 0  ;;  %60 = vperm.xlu0 %558, %v46_v8   ;;  %v177_v11 = vld [vmem:[%s752_s5 + $0x18] sm:$0xff]  ;;  %50 = vperm.xlu1 %559, %v44_v10   ;;  %v176_v12 = vld [vmem:[%s752_s5 + $0x10] sm:$0xff]  ;;  %vm198_vm1 = vcmask 261120   ;;  %vm447_vm6 = vcmask 64512  }
   0x9   :  { %v175_v13 = vld [vmem:[%s752_s5 + $0x8] sm:$0xff]  ;;  %v174_v14 = vld [vmem:[%s752_s5] sm:$0xff]  ;;  %v172_v37 = vld [vmem:[%s751_s4 + $0x10] sm:$0xff]  ;;  %s595_s20 = smov [#allocation2]   ;;  %vm455_vm7 = vcmask 57344  }
   0xa   :  { %529 = vmatmul.mubr.msk.f32.gmra.mxu0 %vm68_vm0, %v43_v9  ;;  %v303_v15 = vld [vmem:[%s754_s7 + $0x8] sm:$0xff]  ;;  %v302_v16 = vld [vmem:[%s754_s7] sm:$0xff]  ;;  %v173_v38 = vld [vmem:[%s751_s4 + $0x18] sm:$0xff]  ;;  %s480_s21 = sshll.u32 %s595_s20, 4  ;;  %s481_s21 = int_to_ptr.vmem [resolvable:$true] %s480_s21 }
   0xb   :  { %v457_v17 = vld [vmem:[%s755_s8] sm:$0xff]  ;;  %v171_v36 = vld [vmem:[%s751_s4 + $0x8] sm:$0xff]  ;;  %s572_s2 = scalar_lea.vmem %s481_s21, 16  ;;  %s576_s3 = scalar_lea.vmem %s481_s21, 32 }
   0xc   :  { %195 = vperm.xlu0 %558, %v177_v11   ;;  %190 = vperm.xlu1 %559, %v176_v12   ;;  %v464_v18 = vld [vmem:[%s756_s9] sm:$0xff]  ;;  %v301_v56 = vld [vmem:[%s753_s6 + $0x8] sm:$0xff]  ;;  %p573_p0 = scmp.ne.s32.totalorder %s481_s21, %s572_s2  ;;  %p577_p1 = scmp.lt.s32.totalorder %s481_s21, %s481_s21 }
   0xd   :  { %v170_v19 = vld [vmem:[%s751_s4] sm:$0xff]  ;;  %p578_p2 = scmp.lt.s32.totalorder %s576_s3, %s572_s2 }
   0xe   :  { %539 = vmatprep.mubr.msk.f32.mxu1 %vm198_vm1, %v170_v19  ;;  %v300_v39 = vld [vmem:[%s753_s6] sm:$0xff] }
   0xf   :  { %553 = vmatprep.mubr.msk.f32.mxu0 %vm198_vm1, %v300_v39  ;;  %v414_v12 = vld [vmem:[%s748_s1] sm:$0xff]  ;;  %p579_p3 = por %p578_p2, %p577_p1 }
  0x10   :  { %185 = vperm.xlu0 %558, %v175_v13   ;;  %180 = vperm.xlu1 %559, %v174_v14  }
  0x11   :  { %p580_p4 = pnand %p579_p3, %p573_p0 }
  0x14   :  { %311 = vperm.xlu0 %558, %v303_v15   ;;  %306 = vperm.xlu1 %559, %v302_v16  }
  0x18   :  { %460 = vperm.xlu0 %558, %v457_v17   ;;  %467 = vperm.xlu1 %559, %v464_v18  }
  0x7d   :  { %v66_v20 = vpop.permute.xlu0 %65 }
  0x7f   :  { %v56_v22 = vpop.permute.xlu1 %55 }
  0x83   :  { %v61_v26 = vpop.permute.xlu0 %60  ;;  %v51_v31 = vpop.permute.xlu1 %50 }
  0x87   :  { %v196_v40 = vpop.permute.xlu0 %195  ;;  %v191_v42 = vpop.permute.xlu1 %190 }
  0x8b   :  { %v186_v46 = vpop.permute.xlu0 %185  ;;  %v181_v51 = vpop.permute.xlu1 %180 }
  0x8f   :  { %v312_v57 = vpop.permute.xlu0 %311  ;;  %v307_v14 = vpop.permute.xlu1 %306 }
  0xc6   :  { %v527_v21 = vpop.f32.mrf.mxu0 }
  0xc7   :  { %v153_v28 = vadd.f32 %v527_v21, %v56_v22 }
  0xc8   :  { %v147_v23 = vpop.f32.mrf.mxu0 }
  0xc9   :  { %v148_v32 = vadd.f32 %v147_v23, %v51_v31  ;;  %v167_v34 = vmax.f32 %v153_v28, 0.0 }
  0xca   :  { %v530_v24 = vpop.f32.mrf.mxu0 }
  0xcb   :  { %v163_v25 = vadd.f32 %v530_v24, %v66_v20  ;;  %v166_v35 = vmax.f32 %v148_v32, 0.0  ;;  %v437_v24 = vmul.f32 -0.5, %v414_v12 }
  0xcc   :  { %v157_v27 = vpop.f32.mrf.mxu0 }
  0xcd   :  { %v169_v29 = vmax.f32 %v163_v25, 0.0  ;;  %v158_v30 = vadd.f32 %v157_v27, %v61_v26  ;;  %v438_v28 = vmul.f32 %v437_v24, %v414_v12 }
  0xcf   :  { %v168_v33 = vmax.f32 %v158_v30, 0.0  ;;  %531 = vmatprep.subr.mxu1 %v169_v29 }
  0xd0   :  { %532 = vmatpush3.msra.mxu1 %v169_v29 }
  0xd1   :  { %533 = vmatprep.subr.mxu1 %v168_v33 }
  0xd2   :  { %534 = vmatpush3.msra.mxu1 %v168_v33 }
  0xd3   :  { %535 = vmatprep.subr.mxu1 %v167_v34 }
  0xd4   :  { %536 = vmatpush3.msra.mxu1 %v167_v34 }
  0xd5   :  { %537 = vmatprep.subr.mxu1 %v166_v35 }
  0xd6   :  { %538 = vmatpush3.msra.mxu1 %v166_v35 }
  0xd7   :  { %540 = vmatmul.mubr.msk.f32.vlgmr.msra.gmra.mxu1 %vm198_vm1, %v171_v36 }
  0xd8   :  { %542 = vmatprep.mubr.msk.f32.mxu1 %vm198_vm1, %v172_v37 }
  0xdb   :  { %543 = vmatmul.mubr.msk.f32.gmra.mxu1 %vm198_vm1, %v173_v38 }
 0x197   :  { %v541_v41 = vpop.f32.mrf.mxu1 }
 0x198   :  { %v283_v48 = vadd.f32 %v541_v41, %v186_v46  ;;  %v461_v41 = vpop.permute.xlu0 %460  ;;  %v468_v46 = vpop.permute.xlu1 %467 }
 0x199   :  { %v277_v43 = vpop.f32.mrf.mxu1 }
 0x19a   :  { %v278_v52 = vadd.f32 %v277_v43, %v181_v51  ;;  %v297_v54 = vmax.f32 %v283_v48, 0.0 }
 0x19b   :  { %v544_v44 = vpop.f32.mrf.mxu1 }
 0x19c   :  { %v293_v45 = vadd.f32 %v544_v44, %v196_v40  ;;  %v296_v55 = vmax.f32 %v278_v52, 0.0 }
 0x19d   :  { %v287_v47 = vpop.f32.mrf.mxu1 }
 0x19e   :  { %v299_v49 = vmax.f32 %v293_v45, 0.0  ;;  %v288_v50 = vadd.f32 %v287_v47, %v191_v42 }
 0x1a0   :  { %v298_v53 = vmax.f32 %v288_v50, 0.0  ;;  %545 = vmatprep.subr.mxu0 %v299_v49 }
 0x1a1   :  { %546 = vmatpush3.msra.mxu0 %v299_v49 }
 0x1a2   :  { %547 = vmatprep.subr.mxu0 %v298_v53 }
 0x1a3   :  { %548 = vmatpush3.msra.mxu0 %v298_v53 }
 0x1a4   :  { %549 = vmatprep.subr.mxu0 %v297_v54 }
 0x1a5   :  { %550 = vmatpush3.msra.mxu0 %v297_v54 }
 0x1a6   :  { %551 = vmatprep.subr.mxu0 %v296_v55 }
 0x1a7   :  { %552 = vmatpush3.msra.mxu0 %v296_v55 }
 0x1a8   :  { %554 = vmatmul.mubr.msk.f32.vlgmr.msra.gmra.mxu0 %vm198_vm1, %v301_v56 }
 0x268   :  { %v555_v58 = vpop.f32.mrf.mxu0 }
 0x269   :  { %v392_v59 = vadd.f32 %v555_v58, %v312_v57 }
 0x26a   :  { %v386_v10 = vpop.f32.mrf.mxu0 }
 0x26b   :  { %v398_v60 = vand.u32 2147483647, %v392_v59  ;;  %v395_v7 = vmax.f32 %v392_v59, 0.0  ;;  %vm396_vm3 = vcmp.ne.f32.partialorder %v392_v59, %v392_v59  ;;  %v387_v15 = vadd.f32 %v386_v10, %v307_v14 }
 0x26d   :  { %v399_v61 = vsub.f32 0.0, %v398_v60 }
 0x26f   :  { %v400_v62 = vmul.f32 1.442695, %v399_v61 }
 0x271   :  { %560 = vpow2.f32 %v400_v62 }
 0x27e   :  { %v561_v63 = vpop.eup %560 }
 0x27f   :  { %v402_v0 = vadd.f32 1.0, %v561_v63  ;;  %v405_v1 = vmul.f32 -0.5, %v561_v63  ;;  %v408_v3 = vand.u32 2147483647, %v561_v63 }
 0x281   :  { %562 = vlog2.f32 %v402_v0  ;;  %v406_v2 = vadd.f32 1.0, %v405_v1  ;;  %vm409_vm2 = vcmp.lt.f32.partialorder %v408_v3, 0.0004427343 }
 0x283   :  { %v407_v6 = vmul.f32 %v561_v63, %v406_v2 }
 0x28e   :  { %v563_v4 = vpop.eup %562 }
 0x28f   :  { %v404_v5 = vmul.f32 0.6931472, %v563_v4 }
 0x291   :  { %v410_v8 = vsel %vm409_vm2, %v407_v6, %v404_v5 }
 0x292   :  { %v411_v9 = vadd.f32 %v410_v8, %v395_v7 }
 0x294   :  { %v412_v11 = vsel %vm396_vm3, %v392_v59, %v411_v9 }
 0x295   :  { %v413_v13 = vadd.f32 0.001, %v412_v11 }
 0x297   :  { %v415_v16 = vmul.f32 %v414_v12, %v413_v13 }
 0x299   :  { %v416_v17 = vadd.f32 %v415_v16, %v387_v15 }
 0x29b   :  { %v417_v18 = vand.u32 2147483647, %v416_v17  ;;  %vm434_vm5 = vcmp.lt.f32.partialorder %v416_v17, 0.0 }
 0x29d   :  { %v418_v19 = vmul.f32 -2.0, %v417_v18  ;;  %v443_v37 = vsub.f32 0.6931472, %v417_v18 }
 0x29f   :  { %v419_v20 = vmul.f32 1.442695, %v418_v19 }
 0x2a1   :  { %564 = vpow2.f32 %v419_v20 }
 0x2a2   :  { %566 = vlog2.f32 %v413_v13 }
 0x2ae   :  { %v565_v21 = vpop.eup %564 }
 0x2af   :  { %v421_v22 = vadd.f32 1.0, %v565_v21  ;;  %v424_v23 = vmul.f32 -0.5, %v565_v21  ;;  %v567_v25 = vpop.eup %566  ;;  %v427_v27 = vand.u32 2147483647, %v565_v21  ;;  %v430_v31 = vsub.f32 1.0, %v565_v21 }
 0x2b0   :  { %v440_v29 = vmul.f32 0.6931472, %v567_v25 }
 0x2b1   :  { %568 = vlog2.f32 %v421_v22  ;;  %v425_v26 = vadd.f32 1.0, %v424_v23  ;;  %vm428_vm4 = vcmp.lt.f32.partialorder %v427_v27, 0.0004427343 }
 0x2b2   :  { %570 = vrcp.f32 %v421_v22  ;;  %v441_v36 = vsub.f32 %v438_v28, %v440_v29 }
 0x2b3   :  { %v426_v34 = vmul.f32 %v565_v21, %v425_v26 }
 0x2b4   :  { %v500_v43 = vadd.f32 -0.9189385, %v441_v36 }
 0x2be   :  { %v569_v30 = vpop.eup %568 }
 0x2bf   :  { %v571_v32 = vpop.eup %570  ;;  %v423_v33 = vmul.f32 0.6931472, %v569_v30 }
 0x2c0   :  { %v433_v35 = vmul.f32 %v571_v32, %v430_v31 }
 0x2c1   :  { %v429_v38 = vsel %vm428_vm4, %v426_v34, %v423_v33 }
 0x2c2   :  { %v435_v39 = vsub.f32 0.0, %v433_v35  ;;  %v444_v40 = vsub.f32 %v443_v37, %v429_v38 }
 0x2c4   :  { %v436_v42 = vsel %vm434_vm5, %v435_v39, %v433_v35  ;;  %v445_v44 = vmul.f32 2.0, %v444_v40 }
 0x2c5   :  { %v463_v45 = vmul.f32 %v461_v41, %v436_v42 }
 0x2c6   :  { %v446_v47 = vsub.f32 %v500_v43, %v445_v44 }
 0x2c7   :  { %v470_v48 = vadd.f32 %v468_v46, %v463_v45 }
 0x2c8   :  { %v448_v49 = vsel %vm447_vm6, %v446_v47, 0.0 }
 0x2c9   :  { %v449_v50 = vrot.slane %v448_v49, 4  ;;  %471 = vst.msk [vmem:[%s757_s10] sm:$0xff] %vm447_vm6, %v470_v48 }
 0x2cb   :  { %v450_v51 = vadd.f32 %v449_v50, %v448_v49 }
 0x2cd   :  { %v451_v52 = vrot.slane %v450_v51, 2 }
 0x2cf   :  { %v452_v53 = vadd.f32 %v451_v52, %v450_v51 }
 0x2d1   :  { %v453_v54 = vrot.slane %v452_v53, 1 }
 0x2d3   :  { %v454_v55 = vadd.f32 %v453_v54, %v452_v53 }
 0x2d5   :  { %456 = vst.msk [vmem:[#allocation2] sm:$0x1] %vm455_vm7, %v454_v55 }
 0x2d6   :  { %583 = shalt.err (!%p580_p4)
}
 0x2d7   :  { %483 = dma.vmem_to_hbm [thread:$0]  %s481_s21, 16, %s758_s11, [#allocation3]  }
 0x2d8   :  { %592 = dma.done.wait [#allocation3], 16  }
 0x2d9   :  { %593 = vsyncadd [#allocation3], 4294967280 }
 0x2da   :  { %489 = vsyncpa [#allocation3], 1 }

</bundles_post_ra>
